<compile_context>
chip_gen: v5e
topology: v5e:2x2
jax: 0.10.0
libtpu: 0.0.40
codegen_flags: <defaults>
</compile_context>

<pallas_src>
import functools
import math

import jax
import jax.numpy as jnp
from jax import lax
from jax.experimental import pallas as pl
from jax.experimental.pallas import tpu as pltpu


def _round_up(x, m):
    return (x + m - 1) // m * m


def _sublane_multiple(dtype):
    itemsize = jnp.dtype(dtype).itemsize
    return {4: 8, 2: 16, 1: 32}.get(itemsize, 8)


# ----------------------------- Stage 1: QKV projection -----------------------


def qkv_projection_kernel(x_ref, wq_ref, wk_ref, wv_ref, q_ref, k_ref, v_ref,
                          *, sm_scale):
    x = x_ref[0]                       # (tile, d_in)
    d_in = x.shape[-1]

    def proj(w_ref):
        w = w_ref[...]                 # (d_in, d_out_p)
        if d_in < 8:
            # VPU path for degenerate contraction depth (toy d_in = 3): a
            # (tile, 3) @ (3, 128) matmul would waste nearly the entire MXU.
            acc = jnp.zeros((x.shape[0], w.shape[-1]), jnp.float32)
            for j in range(d_in):      # static unroll, < 8 terms
                acc = acc + (x[:, j:j + 1].astype(jnp.float32)
                             * w[j:j + 1, :].astype(jnp.float32))
            return acc
        return jnp.dot(x, w, preferred_element_type=jnp.float32)

    # 1/sqrt(d_out) softmax scale folded into Q *after* the f32 accumulation.
    q_ref[0] = (proj(wq_ref) * sm_scale).astype(q_ref.dtype)
    k_ref[0] = proj(wk_ref).astype(k_ref.dtype)
    v_ref[0] = proj(wv_ref).astype(v_ref.dtype)


# ----------------------------- Stage 2: flash attention ----------------------


def flash_attention_kernel(qi_of_ref, kv_of_ref, q_ref, k_ref, v_ref, o_ref,
                           m_scr, l_scr, acc_scr, *, exact_recip):
    step = pl.program_id(1)
    qi = qi_of_ref[step]
    kv = kv_of_ref[step]

    # --- init: first KV step of each (batch, Q-tile) -------------------------
    @pl.when(kv == 0)
    def _():
        m_scr[...] = jnp.full_like(m_scr, -jnp.inf)
        l_scr[...] = jnp.zeros_like(l_scr)
        acc_scr[...] = jnp.zeros_like(acc_scr)

    def scores():
        # Q @ K^T contracting the last dims directly (no K transpose copy).
        return lax.dot_general(q_ref[0], k_ref[0], (((1,), (1,)), ((), ())),
                               preferred_element_type=jnp.float32)

    def online_update(s):
        m_prev = m_scr[...]
        m_new = jnp.maximum(m_prev, jnp.max(s, axis=-1, keepdims=True))
        alpha = jnp.exp(m_prev - m_new)
        # TODO(synk): on v6e/v7x the exp could run in bf16 on the EUP for ~2x
        # throughput; kept f32 so the same kernel stays exact on v5e.
        p = jnp.exp(s - m_new)
        l_scr[...] = alpha * l_scr[...] + jnp.sum(p, axis=-1, keepdims=True)
        acc_scr[...] = alpha * acc_scr[...] + jnp.dot(
            p.astype(v_ref.dtype), v_ref[0], preferred_element_type=jnp.float32)
        m_scr[...] = m_new

    # --- strictly-below-diagonal block: no mask work at all ------------------
    @pl.when(kv < qi)
    def _():
        online_update(scores())

    # --- diagonal block: local triangular mask --------------------------------
    @pl.when(kv == qi)
    def _():
        s = scores()
        tq, tk = s.shape
        row = lax.broadcasted_iota(jnp.int32, (tq, tk), 0)
        col = lax.broadcasted_iota(jnp.int32, (tq, tk), 1)
        online_update(jnp.where(col > row, -jnp.inf, s))

    # The diagonal block is always the last KV step of the triangular schedule
    # for a Q tile -> deferred normalization + single lane-dense store.
    # TODO(synk): nn.Dropout on the attention weights (training mode) is not
    # implemented; dropout=0.0 / eval mode is the identity, reproduced here.
    @pl.when(kv == qi)
    def _():
        if exact_recip:
            inv_l = 1.0 / l_scr[...]
        else:
            inv_l = pl.reciprocal(l_scr[...], approx=True)   # EUP slot, free-ish
        o_ref[0] = (acc_scr[...] * inv_l).astype(o_ref.dtype)


# ----------------------------- wrapper ---------------------------------------


def causal_attention(x, w_query, w_key, w_value, *, block_t=256, mxu_dtype=None):
    """x: (B, T, d_in); w_*: (d_in, d_out) (transpose of nn.Linear weight).

    Returns (B, T, d_out).  mxu_dtype: dtype fed to the MXU (accumulation and
    softmax statistics are always f32).  Defaults to bfloat16 for f32 inputs;
    pass jnp.float32 for exact f32 matmuls.
    """
    B, T, d_in = x.shape
    d_out = w_query.shape[1]

    if mxu_dtype is None:
        mxu_dtype = jnp.bfloat16 if x.dtype == jnp.float32 else x.dtype
    compute_dtype = jnp.dtype(mxu_dtype)
    out_dtype = x.dtype

    sm_scale = 1.0 / math.sqrt(d_out)

    # Lane-dense layouts: pad d_out to a multiple of 128.  Zero weight columns
    # -> zero q/k columns (scores unchanged) and zero output columns (sliced
    # off below).
    d_out_p = _round_up(d_out, 128)

    # Token tile: multiple of the sublane packing of every dtype that appears
    # as the second-to-last dim of a block (f32: 8, bf16: 16, int8/fp8: 32).
    sublane = max(_sublane_multiple(x.dtype), _sublane_multiple(compute_dtype),
                  _sublane_multiple(out_dtype))
    tile = _round_up(min(block_t, _round_up(T, sublane)), sublane)
    T_p = _round_up(T, tile)
    n_t = T_p // tile

    if d_out_p != d_out:
        pad_w = ((0, 0), (0, d_out_p - d_out))
        w_query = jnp.pad(w_query, pad_w)
        w_key = jnp.pad(w_key, pad_w)
        w_value = jnp.pad(w_value, pad_w)
    if T_p != T:
        x = jnp.pad(x, ((0, 0), (0, T_p - T), (0, 0)))

    # ---- Stage 1: Q/K/V projection (one pass over x per token tile) ----------
    # NOTE(v7x): weights have a constant index_map so they never re-DMA; for
    # large d_in, pipeline_mode=pl.Buffered(1) on the weight specs would also
    # drop the dead second buffer under the 64 MiB VMEM budget.
    qkv_shape = jax.ShapeDtypeStruct((B, T_p, d_out_p), compute_dtype)
    q, k, v = pl.pallas_call(
        functools.partial(qkv_projection_kernel, sm_scale=sm_scale),
        out_shape=(qkv_shape, qkv_shape, qkv_shape),
        grid_spec=pltpu.PrefetchScalarGridSpec(
            num_scalar_prefetch=0,
            grid=(B, n_t),
            in_specs=[
                pl.BlockSpec((1, tile, d_in), lambda b, i: (b, i, 0)),
                pl.BlockSpec((d_in, d_out_p), lambda b, i: (0, 0)),
                pl.BlockSpec((d_in, d_out_p), lambda b, i: (0, 0)),
                pl.BlockSpec((d_in, d_out_p), lambda b, i: (0, 0)),
            ],
            out_specs=(
                pl.BlockSpec((1, tile, d_out_p), lambda b, i: (b, i, 0)),
                pl.BlockSpec((1, tile, d_out_p), lambda b, i: (b, i, 0)),
                pl.BlockSpec((1, tile, d_out_p), lambda b, i: (b, i, 0)),
            ),
        ),
        compiler_params=pltpu.CompilerParams(
            dimension_semantics=("parallel", "parallel"),
            vmem_limit_bytes=32 * 1024 * 1024,
        ),
    )(x, w_query, w_key, w_value)

    # ---- Stage 2: triangular flash-attention schedule -------------------------
    # Only the n_t*(n_t+1)/2 blocks at or below the causal diagonal are visited.
    qi_list, kv_list = [], []
    for qi in range(n_t):
        for kvi in range(qi + 1):
            qi_list.append(qi)
            kv_list.append(kvi)
    n_steps = len(qi_list)
    qi_of = jnp.asarray(qi_list, jnp.int32)
    kv_of = jnp.asarray(kv_list, jnp.int32)

    exact_recip = compute_dtype == jnp.dtype(jnp.float32)

    out = pl.pallas_call(
        functools.partial(flash_attention_kernel, exact_recip=exact_recip),
        out_shape=jax.ShapeDtypeStruct((B, T_p, d_out_p), out_dtype),
        grid_spec=pltpu.PrefetchScalarGridSpec(
            num_scalar_prefetch=2,   # qi_of, kv_of live in SMEM, feed index_maps
            grid=(B, n_steps),
            in_specs=[
                # Q tile: block index unchanged across the KV steps of one Q
                # tile -> stays resident in VMEM, no re-DMA.
                pl.BlockSpec((1, tile, d_out_p),
                             lambda b, s, qm, km: (b, qm[s], 0)),
                # K/V tiles: only at/below-diagonal tiles are ever requested.
                # NOTE(v5e): pipeline_mode=pl.Buffered(3) here deepens the KV
                # stream to hide DMA latency on the ~820 GB/s HBM.
                pl.BlockSpec((1, tile, d_out_p),
                             lambda b, s, qm, km: (b, km[s], 0)),
                pl.BlockSpec((1, tile, d_out_p),
                             lambda b, s, qm, km: (b, km[s], 0)),
            ],
            out_specs=pl.BlockSpec((1, tile, d_out_p),
                                   lambda b, s, qm, km: (b, qm[s], 0)),
            scratch_shapes=[
                pltpu.VMEM((tile, 1), jnp.float32),        # running max
                pltpu.VMEM((tile, 1), jnp.float32),        # running sum
                pltpu.VMEM((tile, d_out_p), jnp.float32),  # unnormalized acc
            ],
        ),
        compiler_params=pltpu.CompilerParams(
            dimension_semantics=("parallel", "arbitrary"),
            vmem_limit_bytes=32 * 1024 * 1024,
        ),
    )(qi_of, kv_of, q, k, v)

    return out[:, :T, :d_out]


def reference_causal_attention(x, w_query, w_key, w_value):
    """Pure-JAX reference mirroring the PyTorch forward (eval mode)."""
    q = x @ w_query
    k = x @ w_key
    v = x @ w_value
    scores = jnp.einsum("btd,bsd->bts", q, k)
    t = x.shape[1]
    mask = jnp.triu(jnp.ones((t, t), dtype=bool), k=1)
    scores = jnp.where(mask[None], -jnp.inf, scores)
    w = jax.nn.softmax(scores / math.sqrt(k.shape[-1]), axis=-1)
    return w @ v


if __name__ == "__main__":
    # --- exact setup from the reference script (B=2, T=6, d_in=3, d_out=2) ---
    inputs = jnp.array(
        [
            [0.43, 0.15, 0.89],
            [0.55, 0.87, 0.66],
            [0.57, 0.85, 0.64],
            [0.22, 0.58, 0.33],
            [0.77, 0.25, 0.10],
            [0.05, 0.80, 0.55],
        ],
        dtype=jnp.float32,
    )
    batch = jnp.stack((inputs, inputs), axis=0)   # (2, 6, 3)

    d_in = inputs.shape[1]   # 3
    d_out = 2

    key = jax.random.PRNGKey(0)
    kq, kk, kv = jax.random.split(key, 3)
    bound = 1.0 / math.sqrt(d_in)
    w_query = jax.random.uniform(kq, (d_in, d_out), jnp.float32, -bound, bound)
    w_key = jax.random.uniform(kk, (d_in, d_out), jnp.float32, -bound, bound)
    w_value = jax.random.uniform(kv, (d_in, d_out), jnp.float32, -bound, bound)

    ref = reference_causal_attention(batch, w_query, w_key, w_value)

    # Exact f32-MXU path: tight check against the reference.
    out_f32 = jax.block_until_ready(
        causal_attention(batch, w_query, w_key, w_value, mxu_dtype=jnp.float32))
    assert out_f32.shape == (2, 6, d_out), out_f32.shape
    assert jnp.allclose(out_f32, ref, atol=1e-5, rtol=1e-4), (out_f32, ref)

    # Default (bf16 MXU operands, f32 accumulation) path: flash-attn tolerance.
    out_bf16 = jax.block_until_ready(
        causal_attention(batch, w_query, w_key, w_value))
    assert out_bf16.shape == (2, 6, d_out), out_bf16.shape
    assert jnp.allclose(out_bf16, ref, atol=1e-2, rtol=1e-2), (out_bf16, ref)

    # --- multi-tile check: exercises the triangular schedule, diagonal-only
    # masking, online softmax across KV tiles, and T / d_out padding ----------
    k2 = jax.random.PRNGKey(1)
    kx, kq2, kk2, kv2 = jax.random.split(k2, 4)
    B2, T2, din2, dout2 = 2, 320, 64, 64
    x2 = jax.random.normal(kx, (B2, T2, din2), jnp.float32)
    b2 = 1.0 / math.sqrt(din2)
    wq2 = jax.random.uniform(kq2, (din2, dout2), jnp.float32, -b2, b2)
    wk2 = jax.random.uniform(kk2, (din2, dout2), jnp.float32, -b2, b2)
    wv2 = jax.random.uniform(kv2, (din2, dout2), jnp.float32, -b2, b2)
    ref2 = reference_causal_attention(x2, wq2, wk2, wv2)

    out2_f32 = jax.block_until_ready(
        causal_attention(x2, wq2, wk2, wv2, block_t=256, mxu_dtype=jnp.float32))
    assert out2_f32.shape == (B2, T2, dout2), out2_f32.shape
    assert jnp.allclose(out2_f32, ref2, atol=1e-4, rtol=1e-4), float(
        jnp.max(jnp.abs(out2_f32 - ref2)))

    out2 = jax.block_until_ready(causal_attention(x2, wq2, wk2, wv2))
    assert out2.shape == (B2, T2, dout2), out2.shape
    assert jnp.allclose(out2, ref2, atol=3e-2, rtol=3e-2), float(
        jnp.max(jnp.abs(out2 - ref2)))

    print("KERNEL_OK")
</pallas_src>

<mosaic_0001>
module attributes {stable_mosaic.version = 11 : i64} {
  func.func @qkv_projection_kernel(%arg0: i32, %arg1: i32, %arg2: memref<1x8x3xf32, #tpu.memory_space<vmem>>, %arg3: memref<3x128xf32, #tpu.memory_space<vmem>>, %arg4: memref<3x128xf32, #tpu.memory_space<vmem>>, %arg5: memref<3x128xf32, #tpu.memory_space<vmem>>, %arg6: memref<1x8x128xf32, #tpu.memory_space<vmem>>, %arg7: memref<1x8x128xf32, #tpu.memory_space<vmem>>, %arg8: memref<1x8x128xf32, #tpu.memory_space<vmem>>) attributes {dimension_semantics = [#tpu.dimension_semantics<parallel>, #tpu.dimension_semantics<parallel>], iteration_bounds = array<i64: 2, 1>, scalar_prefetch = 0 : i64, scratch_operands = 0 : i64, tpu.core_type = #tpu.core_type<tc>, window_params = [{transform_indices = @transform_0, window_bounds = array<i64: 1, 8, 3>}, {pipeline_mode = #tpu.pipeline_mode<synchronous>, transform_indices = @transform_1, window_bounds = array<i64: 3, 128>}, {pipeline_mode = #tpu.pipeline_mode<synchronous>, transform_indices = @transform_2, window_bounds = array<i64: 3, 128>}, {pipeline_mode = #tpu.pipeline_mode<synchronous>, transform_indices = @transform_3, window_bounds = array<i64: 3, 128>}, {transform_indices = @transform_4, window_bounds = array<i64: 1, 8, 128>}, {transform_indices = @transform_5, window_bounds = array<i64: 1, 8, 128>}, {transform_indices = @transform_6, window_bounds = array<i64: 1, 8, 128>}]} {
    %c0 = arith.constant 0 : index
    %c0_0 = arith.constant 0 : index
    %c0_1 = arith.constant 0 : index
    %0 = vector.load %arg2[%c0, %c0_0, %c0_1] : memref<1x8x3xf32, #tpu.memory_space<vmem>>, vector<1x8x3xf32>
    %1 = vector.shape_cast %0 : vector<1x8x3xf32> to vector<8x3xf32>
    %c0_2 = arith.constant 0 : index
    %c0_3 = arith.constant 0 : index
    %2 = vector.load %arg3[%c0_2, %c0_3] : memref<3x128xf32, #tpu.memory_space<vmem>>, vector<3x128xf32>
    %cst = arith.constant 0.000000e+00 : f32
    %3 = vector.broadcast %cst : f32 to vector<8x128xf32>
    %4 = vector.extract_strided_slice %1 {offsets = [0, 0], sizes = [8, 1], strides = [1, 1]} : vector<8x3xf32> to vector<8x1xf32>
    %5 = vector.extract_strided_slice %2 {offsets = [0, 0], sizes = [1, 128], strides = [1, 1]} : vector<3x128xf32> to vector<1x128xf32>
    %6 = vector.broadcast %4 : vector<8x1xf32> to vector<8x128xf32>
    %7 = vector.broadcast %5 : vector<1x128xf32> to vector<8x128xf32>
    %8 = arith.mulf %6, %7 : vector<8x128xf32>
    %9 = arith.addf %3, %8 : vector<8x128xf32>
    %10 = vector.extract_strided_slice %1 {offsets = [0, 1], sizes = [8, 1], strides = [1, 1]} : vector<8x3xf32> to vector<8x1xf32>
    %11 = vector.extract_strided_slice %2 {offsets = [1, 0], sizes = [1, 128], strides = [1, 1]} : vector<3x128xf32> to vector<1x128xf32>
    %12 = vector.broadcast %10 : vector<8x1xf32> to vector<8x128xf32>
    %13 = vector.broadcast %11 : vector<1x128xf32> to vector<8x128xf32>
    %14 = arith.mulf %12, %13 : vector<8x128xf32>
    %15 = arith.addf %9, %14 : vector<8x128xf32>
    %16 = vector.extract_strided_slice %1 {offsets = [0, 2], sizes = [8, 1], strides = [1, 1]} : vector<8x3xf32> to vector<8x1xf32>
    %17 = vector.extract_strided_slice %2 {offsets = [2, 0], sizes = [1, 128], strides = [1, 1]} : vector<3x128xf32> to vector<1x128xf32>
    %18 = vector.broadcast %16 : vector<8x1xf32> to vector<8x128xf32>
    %19 = vector.broadcast %17 : vector<1x128xf32> to vector<8x128xf32>
    %20 = arith.mulf %18, %19 : vector<8x128xf32>
    %21 = arith.addf %15, %20 : vector<8x128xf32>
    %cst_4 = arith.constant 0.707106769 : f32
    %22 = vector.broadcast %cst_4 : f32 to vector<8x128xf32>
    %23 = arith.mulf %21, %22 : vector<8x128xf32>
    %c0_5 = arith.constant 0 : index
    %c0_6 = arith.constant 0 : index
    %c0_7 = arith.constant 0 : index
    %24 = vector.load %arg6[%c0_5, %c0_6, %c0_7] : memref<1x8x128xf32, #tpu.memory_space<vmem>>, vector<1x8x128xf32>
    %25 = vector.shape_cast %24 : vector<1x8x128xf32> to vector<8x128xf32>
    %26 = vector.shape_cast %23 : vector<8x128xf32> to vector<1x8x128xf32>
    tpu.vector_store %arg6[%c0_5, %c0_6, %c0_7], %26 {strides = array<i32>} : memref<1x8x128xf32, #tpu.memory_space<vmem>>, vector<1x8x128xf32>,
    %c0_8 = arith.constant 0 : index
    %c0_9 = arith.constant 0 : index
    %27 = vector.load %arg4[%c0_8, %c0_9] : memref<3x128xf32, #tpu.memory_space<vmem>>, vector<3x128xf32>
    %cst_10 = arith.constant 0.000000e+00 : f32
    %28 = vector.broadcast %cst_10 : f32 to vector<8x128xf32>
    %29 = vector.extract_strided_slice %1 {offsets = [0, 0], sizes = [8, 1], strides = [1, 1]} : vector<8x3xf32> to vector<8x1xf32>
    %30 = vector.extract_strided_slice %27 {offsets = [0, 0], sizes = [1, 128], strides = [1, 1]} : vector<3x128xf32> to vector<1x128xf32>
    %31 = vector.broadcast %29 : vector<8x1xf32> to vector<8x128xf32>
    %32 = vector.broadcast %30 : vector<1x128xf32> to vector<8x128xf32>
    %33 = arith.mulf %31, %32 : vector<8x128xf32>
    %34 = arith.addf %28, %33 : vector<8x128xf32>
    %35 = vector.extract_strided_slice %1 {offsets = [0, 1], sizes = [8, 1], strides = [1, 1]} : vector<8x3xf32> to vector<8x1xf32>
    %36 = vector.extract_strided_slice %27 {offsets = [1, 0], sizes = [1, 128], strides = [1, 1]} : vector<3x128xf32> to vector<1x128xf32>
    %37 = vector.broadcast %35 : vector<8x1xf32> to vector<8x128xf32>
    %38 = vector.broadcast %36 : vector<1x128xf32> to vector<8x128xf32>
    %39 = arith.mulf %37, %38 : vector<8x128xf32>
    %40 = arith.addf %34, %39 : vector<8x128xf32>
    %41 = vector.extract_strided_slice %1 {offsets = [0, 2], sizes = [8, 1], strides = [1, 1]} : vector<8x3xf32> to vector<8x1xf32>
    %42 = vector.extract_strided_slice %27 {offsets = [2, 0], sizes = [1, 128], strides = [1, 1]} : vector<3x128xf32> to vector<1x128xf32>
    %43 = vector.broadcast %41 : vector<8x1xf32> to vector<8x128xf32>
    %44 = vector.broadcast %42 : vector<1x128xf32> to vector<8x128xf32>
    %45 = arith.mulf %43, %44 : vector<8x128xf32>
    %46 = arith.addf %40, %45 : vector<8x128xf32>
    %c0_11 = arith.constant 0 : index
    %c0_12 = arith.constant 0 : index
    %c0_13 = arith.constant 0 : index
    %47 = vector.load %arg7[%c0_11, %c0_12, %c0_13] : memref<1x8x128xf32, #tpu.memory_space<vmem>>, vector<1x8x128xf32>
    %48 = vector.shape_cast %47 : vector<1x8x128xf32> to vector<8x128xf32>
    %49 = vector.shape_cast %46 : vector<8x128xf32> to vector<1x8x128xf32>
    tpu.vector_store %arg7[%c0_11, %c0_12, %c0_13], %49 {strides = array<i32>} : memref<1x8x128xf32, #tpu.memory_space<vmem>>, vector<1x8x128xf32>,
    %c0_14 = arith.constant 0 : index
    %c0_15 = arith.constant 0 : index
    %50 = vector.load %arg5[%c0_14, %c0_15] : memref<3x128xf32, #tpu.memory_space<vmem>>, vector<3x128xf32>
    %cst_16 = arith.constant 0.000000e+00 : f32
    %51 = vector.broadcast %cst_16 : f32 to vector<8x128xf32>
    %52 = vector.extract_strided_slice %1 {offsets = [0, 0], sizes = [8, 1], strides = [1, 1]} : vector<8x3xf32> to vector<8x1xf32>
    %53 = vector.extract_strided_slice %50 {offsets = [0, 0], sizes = [1, 128], strides = [1, 1]} : vector<3x128xf32> to vector<1x128xf32>
    %54 = vector.broadcast %52 : vector<8x1xf32> to vector<8x128xf32>
    %55 = vector.broadcast %53 : vector<1x128xf32> to vector<8x128xf32>
    %56 = arith.mulf %54, %55 : vector<8x128xf32>
    %57 = arith.addf %51, %56 : vector<8x128xf32>
    %58 = vector.extract_strided_slice %1 {offsets = [0, 1], sizes = [8, 1], strides = [1, 1]} : vector<8x3xf32> to vector<8x1xf32>
    %59 = vector.extract_strided_slice %50 {offsets = [1, 0], sizes = [1, 128], strides = [1, 1]} : vector<3x128xf32> to vector<1x128xf32>
    %60 = vector.broadcast %58 : vector<8x1xf32> to vector<8x128xf32>
    %61 = vector.broadcast %59 : vector<1x128xf32> to vector<8x128xf32>
    %62 = arith.mulf %60, %61 : vector<8x128xf32>
    %63 = arith.addf %57, %62 : vector<8x128xf32>
    %64 = vector.extract_strided_slice %1 {offsets = [0, 2], sizes = [8, 1], strides = [1, 1]} : vector<8x3xf32> to vector<8x1xf32>
    %65 = vector.extract_strided_slice %50 {offsets = [2, 0], sizes = [1, 128], strides = [1, 1]} : vector<3x128xf32> to vector<1x128xf32>
    %66 = vector.broadcast %64 : vector<8x1xf32> to vector<8x128xf32>
    %67 = vector.broadcast %65 : vector<1x128xf32> to vector<8x128xf32>
    %68 = arith.mulf %66, %67 : vector<8x128xf32>
    %69 = arith.addf %63, %68 : vector<8x128xf32>
    %c0_17 = arith.constant 0 : index
    %c0_18 = arith.constant 0 : index
    %c0_19 = arith.constant 0 : index
    %70 = vector.load %arg8[%c0_17, %c0_18, %c0_19] : memref<1x8x128xf32, #tpu.memory_space<vmem>>, vector<1x8x128xf32>
    %71 = vector.shape_cast %70 : vector<1x8x128xf32> to vector<8x128xf32>
    %72 = vector.shape_cast %69 : vector<8x128xf32> to vector<1x8x128xf32>
    tpu.vector_store %arg8[%c0_17, %c0_18, %c0_19], %72 {strides = array<i32>} : memref<1x8x128xf32, #tpu.memory_space<vmem>>, vector<1x8x128xf32>,
    return
  }
  func.func @transform_0(%arg0: i32, %arg1: i32) -> (i32, i32, i32) {
    %c0_i32 = arith.constant 0 : i32
    %c0_i32_0 = arith.constant 0 : i32
    return %arg0, %arg1, %c0_i32 : i32, i32, i32
  }
  func.func @transform_1(%arg0: i32, %arg1: i32) -> (i32, i32) {
    %c0_i32 = arith.constant 0 : i32
    %c0_i32_0 = arith.constant 0 : i32
    %c0_i32_1 = arith.constant 0 : i32
    return %c0_i32, %c0_i32_0 : i32, i32
  }
  func.func @transform_2(%arg0: i32, %arg1: i32) -> (i32, i32) {
    %c0_i32 = arith.constant 0 : i32
    %c0_i32_0 = arith.constant 0 : i32
    %c0_i32_1 = arith.constant 0 : i32
    return %c0_i32, %c0_i32_0 : i32, i32
  }
  func.func @transform_3(%arg0: i32, %arg1: i32) -> (i32, i32) {
    %c0_i32 = arith.constant 0 : i32
    %c0_i32_0 = arith.constant 0 : i32
    %c0_i32_1 = arith.constant 0 : i32
    return %c0_i32, %c0_i32_0 : i32, i32
  }
  func.func @transform_4(%arg0: i32, %arg1: i32) -> (i32, i32, i32) {
    %c0_i32 = arith.constant 0 : i32
    %c0_i32_0 = arith.constant 0 : i32
    return %arg0, %arg1, %c0_i32 : i32, i32, i32
  }
  func.func @transform_5(%arg0: i32, %arg1: i32) -> (i32, i32, i32) {
    %c0_i32 = arith.constant 0 : i32
    %c0_i32_0 = arith.constant 0 : i32
    return %arg0, %arg1, %c0_i32 : i32, i32, i32
  }
  func.func @transform_6(%arg0: i32, %arg1: i32) -> (i32, i32, i32) {
    %c0_i32 = arith.constant 0 : i32
    %c0_i32_0 = arith.constant 0 : i32
    return %arg0, %arg1, %c0_i32 : i32, i32, i32
  }
}

</mosaic_0001>

<bundles_post_ra>
// kernel: tpu_custom_call.1
= control target key start
LH: loop header
LB: loop body
LE: loop exit
PB: predicated region body
PF: predicated region fallthrough
CT: control target
= control target key end

     0   :  { %s1003_s0 = inlined_call_operand.vmem [shape: f32[2,8,3], index: 0, kind: input, shape index: {}]   ;;  %s1004_s1 = inlined_call_operand.vmem [shape: f32[3,128], index: 1, kind: input, shape index: {}]   ;;  %s1005_s2 = inlined_call_operand.vmem [shape: f32[3,128], index: 2, kind: input, shape index: {}]   ;;  %s1006_s3 = inlined_call_operand.vmem [shape: f32[3,128], index: 3, kind: input, shape index: {}]   ;;  %s1007_s4 = inlined_call_operand.hbm [shape: f32[2,8,128], index: 4, kind: output, shape index: {0}]   ;;  %s1008_s5 = inlined_call_operand.hbm [shape: f32[2,8,128], index: 5, kind: output, shape index: {1}]   ;;  %s1009_s6 = inlined_call_operand.hbm [shape: f32[2,8,128], index: 6, kind: output, shape index: {2}]  }
   0x1   :  { %1016 = sst [smem:[#allocation12_spill]] %s1003_s0 }
   0x2   :  { %12 = vsyncpa [#allocation3], 0 }
   0x3   :  { %14 = vsyncpa [#allocation3 + $0x1], 0 }
   0x4   :  { %15 = vsyncpa [#allocation5], 0 }
   0x5   :  { %17 = vsyncpa [#allocation5 + $0x1], 0  ;;  %s802_s21 = smov 0   ;;  %s804_s22 = smov 0  }
   0x6   :  { %s806_s23 = smov 0   ;;  %s808_s24 = smov 0  }
   0x7   :  { %s810_s25 = smov 0   ;;  %s812_s26 = smov 0  }
   0x8 LB: > { %s535_s27 = sadd.s32 4294967295, %s762_s26   ;;  %s1010_s28 = sadd.s32 4294967294, %s762_s26   ;;  %s762_s26 = sphi %s812_s26, %s23_s26   ;;  %s758_s25 = sphi %s810_s25, %s1036_s25   ;;  %s754_s24 = sphi %s808_s24, %s1035_s24   ;;  %s750_s23 = sphi %s806_s23, %s1034_s23   ;;  %s746_s22 = sphi %s804_s22, %s1033_s22   ;;  %s742_s21 = sphi %s802_s21, %s1032_s21  }
   0x9   : > { %s35_s29 = sadd.s32 1, %s758_s25  ;;  %s135_s30 = sadd.s32 1, %s750_s23 }
   0xa   : > { %p37_p0 = scmp.ge.s32.totalorder %s35_s29, 2  ;;  %p145_p1 = scmp.ne.s32.totalorder %s750_s23, %s746_s22 }
   0xb   : > { %p146_p2 = scmp.eq.s32.totalorder %s535_s27, 1  ;;  %p151_p3 = scmp.ne.s32.totalorder %s746_s22, %s742_s21 }
   0xc   : > { %s1038_s29 = smov (%p37_p0, %s35_s29), 0  ;;  %p152_p5 = scmp.eq.s32.totalorder %s1010_s28, 1 }
   0xd   : > { %p844_p4 = por %p146_p2, %p145_p1  ;;  %s130_s8 = ssub.s32 %s758_s25, %s1038_s29 }
   0xe   : > { %p539_p6 = scmp.ge.s32.totalorder %s762_s26, 1  ;;  %p133_p7 = scmp.eq.s32.totalorder %s130_s8, 0 }
   0xf   : > { %p853_p8 = por %p152_p5, %p151_p3  ;;  %p245_p9 = scmp.lt.s32.totalorder %s762_s26, 3 }
  0x10   : > { %s859_s10 = scalar_select %p133_p7, %s750_s23, %s135_s30  }
  0x11   : > { %p246_p10 = pnand %p539_p6, %p245_p9 }
  0x13   : > { %249 = sbr.rel (%p246_p10) target bundleno = 198 (0xc6), region = 36 }
  0x18   : > { %p287_p11 = scmp.lt.s32.totalorder %s754_s24, 1  ;;  %v764_v0 = vmov 0   ;;  %v765_v1 = vmov 2   ;;  %s1019_s0 = sld [smem:[#allocation12_spill]]  ;;  %v766_v3 = vmov 1  }
  0x19   : > { %620 = vset.pattern.permute.xlu0 %v764_v0  ;;  %622 = vset.pattern.permute.xlu1 %v765_v1  ;;  %s1011_s16 = sand.u32 1, %s746_s22   ;;  %v295_v5 = vld [vmem:[%s1004_s1] sm:$0x7]  ;;  %s885_s13 = sand.u32 1, %s535_s27  }
  0x1a   : > { %s288_s11 = scalar_select %p287_p11, %s754_s24, 1  ;;  %v320_v6 = vld [vmem:[%s1005_s2] sm:$0x7]  ;;  %v301_v8 = vperm.slane %v295_v5, 0  ;;  %v315_v11 = vperm.slane %v295_v5, 2  ;;  %v308_v13 = vperm.slane %v295_v5, 1 }
  0x1b   : > { %v331_v7 = vld [vmem:[%s1006_s3] sm:$0x7]  ;;  %v321_v9 = vperm.slane %v320_v6, 0  ;;  %v327_v12 = vperm.slane %v320_v6, 2  ;;  %v324_v14 = vperm.slane %v320_v6, 1 }
  0x1c   : > { %s543_s12 = sshll.u32 %s288_s11, 3  ;;  %s878_s11 = sshll.u32 %s1011_s16, 3  ;;  %v332_v10 = vperm.slane %v331_v7, 0  ;;  %v335_v15 = vperm.slane %v331_v7, 1  ;;  %v338_v16 = vperm.slane %v331_v7, 2 }
  0x1d   : > { %s279_s17 = scalar_lea.vmem [#allocation4], %s878_s11  ;;  %s1012_s28 = scalar_lea.vmem [#allocation6], %s878_s11 }
  0x1e   : > { %s293_s15 = scalar_lea.vmem %s1019_s0, %s543_s12  ;;  %s881_s12 = sshll.u32 %s754_s24, 3 }
  0x1f   : > { %v294_v2 = vld [vmem:[%s293_s15] sm:$0xff]  ;;  %s379_s24 = scalar_lea.hbm %s1008_s5, %s881_s12  ;;  %s894_s18 = sshll.u32 %s279_s17, 4 }
  0x20   : > { %298 = vperm.xlu0 %620, %v294_v2   ;;  %312 = vperm.xlu1 %622, %v294_v2   ;;  %1020 = sst [smem:[#allocation9_spill]] %s894_s18  ;;  %s394_s20 = scalar_lea.hbm %s1009_s6, %s881_s12 }
  0x21   : > { %s364_s14 = scalar_lea.hbm %s1007_s4, %s881_s12  ;;  %s905_s15 = sshll.u32 %s379_s24, 4  ;;  %s384_s15 = int_to_ptr.hbm [resolvable:$true] %s905_s15 }
  0x22   : > { %s910_s27 = sshll.u32 %s1012_s28, 4  ;;  %s912_s19 = sshll.u32 %s394_s20, 4  ;;  %s399_s19 = int_to_ptr.hbm [resolvable:$true] %s912_s19 }
  0x23   : > { %1021 = sst [smem:[#allocation10_spill]] %s910_s27  ;;  %s272_s16 = scalar_lea.vmem [#allocation2], %s878_s11 }
  0x24   : > { %s915_s30 = sshll.u32 %s272_s16, 4  ;;  %s917_s12 = sshll.u32 %s364_s14, 4  ;;  %s369_s12 = int_to_ptr.hbm [resolvable:$true] %s917_s12 }
  0x25   : > { %1022 = sst [smem:[#allocation11_spill]] %s915_s30  ;;  %s348_s24 = scalar_lea.sflag [#allocation5], %s885_s13 }
  0x26   : > { %s638_s20 = sshra.s32 %s384_s15, 4  ;;  %s644_s18 = scalar_lea.hbm %s1008_s5, 16  ;;  %s639_s20 = int_to_ptr.hbm [resolvable:$true] %s638_s20 }
  0x27   : > { %s640_s8 = scalar_lea.hbm %s639_s20, 8  ;;  %p645_p1 = scmp.lt.s32.totalorder %s639_s20, %s1008_s5 }
  0x28   : > { %621 = vset.pattern.permute.xlu0 %v766_v3  ;;  %p641_p12 = scmp.ne.s32.totalorder %s639_s20, %s640_s8  ;;  %p646_p2 = scmp.lt.s32.totalorder %s644_s18, %s640_s8 }
  0x29   : > { %305 = vperm.xlu0 %621, %v294_v2  }
  0x2a   : > { %p642_p13 = pnand %p641_p12, %p844_p4  ;;  %p647_p3 = por %p646_p2, %p645_p1 }
  0x2c   : > { %p643_p0 = pneg %p642_p13 }
  0x2e   : > { %p648_p5 = pnand %p647_p3, %p643_p0 }
  0x31   : > { %623 = vset.pattern.permute.xlu0 %v765_v1 }
  0x92   : > { %v299_v4 = vpop.permute.xlu0 %298  ;;  %v313_v17 = vpop.permute.xlu1 %312 }
  0x93   : > { %v302_v18 = vmul.f32 %v301_v8, %v299_v4  ;;  %v322_v19 = vmul.f32 %v321_v9, %v299_v4  ;;  %v333_v20 = vmul.f32 %v332_v10, %v299_v4  ;;  %v316_v22 = vmul.f32 %v315_v11, %v313_v17 }
  0x94   : > { %v328_v23 = vmul.f32 %v327_v12, %v313_v17  ;;  %v339_v27 = vmul.f32 %v338_v16, %v313_v17 }
  0x9b   : > { %v306_v21 = vpop.permute.xlu0 %305 }
  0x9c   : > { %v309_v24 = vmul.f32 %v308_v13, %v306_v21  ;;  %v325_v25 = vmul.f32 %v324_v14, %v306_v21  ;;  %v336_v26 = vmul.f32 %v335_v15, %v306_v21 }
  0x9e   : > { %v310_v28 = vadd.f32 %v309_v24, %v302_v18  ;;  %v326_v29 = vadd.f32 %v325_v25, %v322_v19  ;;  %v337_v30 = vadd.f32 %v336_v26, %v333_v20 }
  0xa0   : > { %v317_v31 = vadd.f32 %v316_v22, %v310_v28  ;;  %v329_v32 = vadd.f32 %v328_v23, %v326_v29  ;;  %v340_v33 = vadd.f32 %v339_v27, %v337_v30 }
  0xa2   : > { %v318_v34 = vmul.f32 0.70710677, %v317_v31  ;;  %330 = vst [vmem:[%s279_s17] sm:$0xff] %v329_v32 }
  0xa3   : > { %651 = shalt.err (!%p648_p5)
}
  0xa4   : > { %s1023_s17 = sld [smem:[#allocation9_spill]]  ;;  %s1025_s28 = scalar_lea.vmem [#allocation6], %s878_s11  ;;  %319 = vst [vmem:[%s272_s16] sm:$0xff] %v318_v34 }
  0xa5   : > { %341 = vst [vmem:[%s1025_s28] sm:$0xff] %v340_v33  ;;  %s666_s0 = sshra.s32 %s399_s19, 4  ;;  %s672_s8 = scalar_lea.hbm %s1009_s6, 16  ;;  %s667_s0 = int_to_ptr.hbm [resolvable:$true] %s666_s0 }
  0xa6   : > { %s668_s18 = scalar_lea.hbm %s667_s0, 8  ;;  %p673_p10 = scmp.lt.s32.totalorder %s667_s0, %s1009_s6 }
  0xa7   : > { %p669_p6 = scmp.ne.s32.totalorder %s667_s0, %s668_s18  ;;  %p674_p11 = scmp.lt.s32.totalorder %s672_s8, %s668_s18 }
  0xa9   : > { %p670_p7 = pnand %p669_p6, %p844_p4  ;;  %p675_p12 = por %p674_p11, %p673_p10 }
  0xaa   : > { %s1024_s30 = int_to_ptr.vmem [resolvable:$true] %s1023_s17 }
  0xab   : > { %553 = dma.vmem_to_hbm [thread:$0]  (%p844_p4), %s1024_s30, 128, %s384_s15, %s348_s24  }
  0xac   : > { %p671_p9 = pneg %p670_p7 }
  0xae   : > { %p676_p13 = pnand %p675_p12, %p671_p9 }
  0xb0   : > { %679 = shalt.err (!%p676_p13)
}
  0xb1   : > { %s1026_s16 = sld [smem:[#allocation10_spill]]  ;;  %s1028_s15 = sand.u32 1, %s746_s22  }
  0xb2   : > { %s343_s30 = scalar_lea.sflag [#allocation3], %s1028_s15  ;;  %s694_s28 = sshra.s32 %s369_s12, 4  ;;  %s695_s28 = int_to_ptr.hbm [resolvable:$true] %s694_s28 }
  0xb3   : > { %s696_s0 = scalar_lea.hbm %s695_s28, 8  ;;  %s700_s27 = scalar_lea.hbm %s1007_s4, 16 }
  0xb4   : > { %p697_p0 = scmp.ne.s32.totalorder %s695_s28, %s696_s0  ;;  %p701_p3 = scmp.lt.s32.totalorder %s695_s28, %s1007_s4 }
  0xb5   : > { %p702_p5 = scmp.lt.s32.totalorder %s700_s27, %s696_s0 }
  0xb6   : > { %p698_p1 = pnand %p697_p0, %p844_p4 }
  0xb7   : > { %s1027_s11 = int_to_ptr.vmem [resolvable:$true] %s1026_s16  ;;  %p703_p6 = por %p702_p5, %p701_p3 }
  0xb8   : > { %554 = dma.vmem_to_hbm [thread:$0]  (%p844_p4), %s1027_s11, 128, %s399_s19, %s348_s24  }
  0xb9   : > { %p699_p2 = pneg %p698_p1 }
  0xbb   : > { %p704_p7 = pnand %p703_p6, %p699_p2 }
  0xbd   : > { %707 = shalt.err (!%p704_p7)
}
  0xbe   : > { %s1029_s19 = sld [smem:[#allocation11_spill]] }
  0xc4   : > { %s1030_s24 = int_to_ptr.vmem [resolvable:$true] %s1029_s19 }
  0xc5   : > { %552 = dma.vmem_to_hbm [thread:$0]  (%p844_p4), %s1030_s24, 128, %s369_s12, %s343_s30  }
  0xc6 PF: > { %p568_p9 = scmp.ge.s32.totalorder %s762_s26, 2  ;;  %s410_s14 = sand.u32 1, %s742_s21  }
  0xc7   : > { %s411_s17 = scalar_lea.sflag [#allocation3], %s410_s14 }
  0xc8   : > { %p559_p10 = pnand %p568_p9, %p853_p8 }
  0xca   : > { %p560_p11 = pneg %p559_p10 }
  0xcc   : > { %733 = dma.done.wait (%p560_p11), %s411_s17, 128  }
  0xcd   : > { %735 = vsyncadd (%p560_p11), %s411_s17, 4294967168  ;;  %s1031_s16 = sadd.s32 4294967294, %s762_s26  }
  0xce   : > { %s420_s7 = sand.u32 1, %s1031_s16  }
  0xcf   : > { %s421_s11 = scalar_lea.sflag [#allocation5], %s420_s7 }
  0xd0   : > { %737 = dma.done.wait (%p560_p11), %s421_s11, 256  }
  0xd1   : > { %739 = vsyncadd (%p560_p11), %s421_s11, 4294967040  ;;  %s23_s26 = sadd.s32 1, %s762_s26   ;;  %s1032_s21 = smov %s746_s22 }
  0xd2   : > { %p20_p4 = scmp.ge.s32.totalorder %s23_s26, 4   ;;  %s1033_s22 = smov %s750_s23 }
  0xd3   : > { %s1034_s23 = smov %s859_s10  ;;  %s1035_s24 = smov %s758_s25 }
  0xd4   : > { %s1036_s25 = smov %s1038_s29  ;;  %22 = sbr.rel (!%p20_p4) target bundleno = 8 (0x8), region = 103 }
  0xd9   :  { %437 = vsyncpa [#allocation3], 1 }
  0xda   :  { %439 = vsyncpa [#allocation3 + $0x1], 1 }
  0xdb   :  { %440 = vsyncpa [#allocation5], 1 }
  0xdc   :  { %442 = vsyncpa [#allocation5 + $0x1], 1 }

</bundles_post_ra>
